<compile_context>
chip_gen: v5e
topology: v5e:2x2
jax: 0.10.0
libtpu: 0.0.40
codegen_flags: <defaults>
</compile_context>

<pallas_src>
import functools
import math

import jax
import jax.numpy as jnp
from jax.experimental import pallas as pl
from jax.experimental.pallas import tpu as pltpu


# ----------------------------- fused kernel -----------------------------

def _mha_kernel(q_ref, k_ref, v_ref,
                wq_ref, bq_ref, wk_ref, bk_ref, wv_ref, bv_ref,
                o_ref, *, num_heads, scale, last_layer):
    """One grid step = one batch element, all heads processed in-kernel."""
    q_in = q_ref[0].astype(jnp.float32)          # (Lq, U)  un-projected queries
    k_in = k_ref[0].astype(jnp.float32)          # (Lk, U)
    v_in = v_ref[0].astype(jnp.float32)          # (Lk, U)

    # Fused projections + ReLU; weights stay resident in VMEM for the call.
    Q = jax.nn.relu(jnp.dot(q_in, wq_ref[...],
                            preferred_element_type=jnp.float32) + bq_ref[...])
    K = jax.nn.relu(jnp.dot(k_in, wk_ref[...],
                            preferred_element_type=jnp.float32) + bk_ref[...])
    if not last_layer:
        V = jax.nn.relu(jnp.dot(v_in, wv_ref[...],
                                preferred_element_type=jnp.float32) + bv_ref[...])

    # query mask = sign(|sum(queries, -1)|): 1 where the raw query row is nonzero.
    qsum = jnp.sum(q_in, axis=-1, keepdims=True)                 # (Lq, 1)
    qmask = (jnp.abs(qsum) > 0.0).astype(jnp.float32)            # (Lq, 1)

    d = Q.shape[-1] // num_heads
    ctx_heads = []
    for h in range(num_heads):                                   # static unroll
        qh = Q[:, h * d:(h + 1) * d]                             # (Lq, d)
        kh = K[:, h * d:(h + 1) * d]                             # (Lk, d)
        s = jnp.dot(qh, kh.T, preferred_element_type=jnp.float32) * scale  # (Lq, Lk)
        if not last_layer:
            s = s - jnp.max(s, axis=-1, keepdims=True)
            p = jnp.exp(s)
            p = p * pl.reciprocal(jnp.sum(p, axis=-1, keepdims=True), approx=True)
        else:
            p = s
        p = p * qmask
        # TODO(synk): nn.Dropout omitted (dropout_rate=0 / inference) — identity.
        if last_layer:
            o_ref[h, 0, :, :] = p.astype(o_ref.dtype)
        else:
            vh = V[:, h * d:(h + 1) * d]                         # (Lk, d)
            ctx_heads.append(jnp.dot(p, vh, preferred_element_type=jnp.float32))

    if not last_layer:
        ctx = jnp.concatenate(ctx_heads, axis=-1)                # (Lq, U) heads merged
        o_ref[0] = (ctx + q_in).astype(o_ref.dtype)              # residual: += queries


# ----------------------------- wrapper -----------------------------

def multihead_attention(queries, keys, values, params, *, num_heads,
                        last_layer=False):
    """queries: (B, Lq, U) [or (B, U)], keys/values: (B, Lk, U).

    Returns (B, Lq, U) for last_layer=False, or (num_heads*B, Lq, Lk)
    (masked, un-softmaxed score maps) for last_layer=True — matching the
    PyTorch module's forward().
    """
    if queries.ndim == 2:                       # PyTorch's concat_dim==1 path
        queries = queries[:, None, :]
    B, Lq, U = queries.shape
    _, Lk, _ = keys.shape
    assert U % num_heads == 0, "num_units must be divisible by num_heads"
    scale = 1.0 / math.sqrt(U // num_heads)

    kernel = functools.partial(_mha_kernel, num_heads=num_heads, scale=scale,
                               last_layer=last_layer)

    if last_layer:
        out_shape = jax.ShapeDtypeStruct((num_heads, B, Lq, Lk), jnp.float32)
        out_spec = pl.BlockSpec((num_heads, 1, Lq, Lk), lambda b: (0, b, 0, 0))
    else:
        out_shape = jax.ShapeDtypeStruct((B, Lq, U), jnp.float32)
        out_spec = pl.BlockSpec((1, Lq, U), lambda b: (b, 0, 0))

    out = pl.pallas_call(
        kernel,
        out_shape=out_shape,
        grid=(B,),
        in_specs=[
            pl.BlockSpec((1, Lq, U), lambda b: (b, 0, 0)),   # queries
            pl.BlockSpec((1, Lk, U), lambda b: (b, 0, 0)),   # keys
            pl.BlockSpec((1, Lk, U), lambda b: (b, 0, 0)),   # values
            pl.BlockSpec((U, U), lambda b: (0, 0)),          # Wq
            pl.BlockSpec((1, U), lambda b: (0, 0)),          # bq
            pl.BlockSpec((U, U), lambda b: (0, 0)),          # Wk
            pl.BlockSpec((1, U), lambda b: (0, 0)),          # bk
            pl.BlockSpec((U, U), lambda b: (0, 0)),          # Wv
            pl.BlockSpec((1, U), lambda b: (0, 0)),          # bv
        ],
        out_specs=out_spec,
        compiler_params=pltpu.CompilerParams(
            dimension_semantics=("parallel",)),
    )(queries, keys, values,
      params["wq"], params["bq"], params["wk"], params["bk"],
      params["wv"], params["bv"])

    if last_layer:
        # chunk h of the torch.cat lives at rows [h*B:(h+1)*B]
        out = out.reshape(num_heads * B, Lq, Lk)
    return out


# ----------------------------- pure-JAX reference -----------------------------

def mha_reference(queries, keys, values, params, *, num_heads, last_layer=False):
    if queries.ndim == 2:
        queries = queries[:, None, :]
    U = queries.shape[-1]
    d = U // num_heads
    relu = jax.nn.relu
    Q = relu(queries @ params["wq"] + params["bq"])
    K = relu(keys @ params["wk"] + params["bk"])
    V = relu(values @ params["wv"] + params["bv"])
    Q_ = jnp.concatenate(jnp.split(Q, num_heads, axis=-1), axis=0)
    K_ = jnp.concatenate(jnp.split(K, num_heads, axis=-1), axis=0)
    V_ = jnp.concatenate(jnp.split(V, num_heads, axis=-1), axis=0)
    scores = jnp.einsum("bqd,bkd->bqk", Q_, K_) / math.sqrt(d)
    if not last_layer:
        scores = jax.nn.softmax(scores, axis=-1)
    qmask = jnp.sign(jnp.abs(jnp.sum(queries, axis=-1)))          # (B, Lq)
    qmask = jnp.tile(qmask, (num_heads, 1))[:, :, None]            # (hB, Lq, 1)
    out = scores * qmask
    if last_layer:
        return out
    out = jnp.einsum("bqk,bkd->bqd", out, V_)
    out = jnp.concatenate(jnp.split(out, num_heads, axis=0), axis=-1)
    return out + queries


# ----------------------------- demo -----------------------------

def init_params(num_units, key):
    ks = jax.random.split(key, 6)
    s = 1.0 / math.sqrt(num_units)
    u = lambda k, shape: jax.random.uniform(k, shape, jnp.float32, -s, s)
    return {
        "wq": u(ks[0], (num_units, num_units)), "bq": u(ks[1], (1, num_units)),
        "wk": u(ks[2], (num_units, num_units)), "bk": u(ks[3], (1, num_units)),
        "wv": u(ks[4], (num_units, num_units)), "bv": u(ks[5], (1, num_units)),
    }


if __name__ == "__main__":
    num_units, num_heads = 32, 4
    B, Lq, Lk = 2, 16, 16

    key = jax.random.PRNGKey(0)
    kq, kk, kv, kw = jax.random.split(key, 4)
    queries = jax.random.normal(kq, (B, Lq, num_units), jnp.float32)
    keys_in = jax.random.normal(kk, (B, Lk, num_units), jnp.float32)
    values = jax.random.normal(kv, (B, Lk, num_units), jnp.float32)
    # Zero one query row to exercise the query-sum mask path.
    queries = queries.at[1, 3, :].set(0.0)
    params = init_params(num_units, kw)

    # Default path: softmax attention + residual.
    out = multihead_attention(queries, keys_in, values, params,
                              num_heads=num_heads, last_layer=False)
    out = jax.block_until_ready(out)
    assert out.shape == (B, Lq, num_units)
    ref = mha_reference(queries, keys_in, values, params,
                        num_heads=num_heads, last_layer=False)
    assert jnp.allclose(out, ref, rtol=2e-2, atol=2e-2)

    # last_layer=True path: masked, un-softmaxed score maps.
    attn = multihead_attention(queries, keys_in, values, params,
                               num_heads=num_heads, last_layer=True)
    attn = jax.block_until_ready(attn)
    assert attn.shape == (num_heads * B, Lq, Lk)
    ref_attn = mha_reference(queries, keys_in, values, params,
                             num_heads=num_heads, last_layer=True)
    assert jnp.allclose(attn, ref_attn, rtol=2e-2, atol=2e-2)

    print("KERNEL_OK")
</pallas_src>

<mosaic_0001>
module attributes {stable_mosaic.version = 11 : i64} {
  func.func @_mha_kernel(%arg0: i32, %arg1: memref<1x16x32xf32, #tpu.memory_space<vmem>>, %arg2: memref<1x16x32xf32, #tpu.memory_space<vmem>>, %arg3: memref<1x16x32xf32, #tpu.memory_space<vmem>>, %arg4: memref<32x32xf32, #tpu.memory_space<vmem>>, %arg5: memref<1x32xf32, #tpu.memory_space<vmem>>, %arg6: memref<32x32xf32, #tpu.memory_space<vmem>>, %arg7: memref<1x32xf32, #tpu.memory_space<vmem>>, %arg8: memref<32x32xf32, #tpu.memory_space<vmem>>, %arg9: memref<1x32xf32, #tpu.memory_space<vmem>>, %arg10: memref<1x16x32xf32, #tpu.memory_space<vmem>>) attributes {dimension_semantics = [#tpu.dimension_semantics<parallel>], iteration_bounds = array<i64: 2>, scalar_prefetch = 0 : i64, scratch_operands = 0 : i64, tpu.core_type = #tpu.core_type<tc>, window_params = [{transform_indices = @transform_0, window_bounds = array<i64: 1, 16, 32>}, {transform_indices = @transform_1, window_bounds = array<i64: 1, 16, 32>}, {transform_indices = @transform_2, window_bounds = array<i64: 1, 16, 32>}, {pipeline_mode = #tpu.pipeline_mode<synchronous>, transform_indices = @transform_3, window_bounds = array<i64: 32, 32>}, {pipeline_mode = #tpu.pipeline_mode<synchronous>, transform_indices = @transform_4, window_bounds = array<i64: 1, 32>}, {pipeline_mode = #tpu.pipeline_mode<synchronous>, transform_indices = @transform_5, window_bounds = array<i64: 32, 32>}, {pipeline_mode = #tpu.pipeline_mode<synchronous>, transform_indices = @transform_6, window_bounds = array<i64: 1, 32>}, {pipeline_mode = #tpu.pipeline_mode<synchronous>, transform_indices = @transform_7, window_bounds = array<i64: 32, 32>}, {pipeline_mode = #tpu.pipeline_mode<synchronous>, transform_indices = @transform_8, window_bounds = array<i64: 1, 32>}, {transform_indices = @transform_9, window_bounds = array<i64: 1, 16, 32>}]} {
    %c0 = arith.constant 0 : index
    %c0_0 = arith.constant 0 : index
    %c0_1 = arith.constant 0 : index
    %0 = vector.load %arg1[%c0, %c0_0, %c0_1] : memref<1x16x32xf32, #tpu.memory_space<vmem>>, vector<1x16x32xf32>
    %1 = vector.shape_cast %0 : vector<1x16x32xf32> to vector<16x32xf32>
    %c0_2 = arith.constant 0 : index
    %c0_3 = arith.constant 0 : index
    %c0_4 = arith.constant 0 : index
    %2 = vector.load %arg2[%c0_2, %c0_3, %c0_4] : memref<1x16x32xf32, #tpu.memory_space<vmem>>, vector<1x16x32xf32>
    %3 = vector.shape_cast %2 : vector<1x16x32xf32> to vector<16x32xf32>
    %c0_5 = arith.constant 0 : index
    %c0_6 = arith.constant 0 : index
    %c0_7 = arith.constant 0 : index
    %4 = vector.load %arg3[%c0_5, %c0_6, %c0_7] : memref<1x16x32xf32, #tpu.memory_space<vmem>>, vector<1x16x32xf32>
    %5 = vector.shape_cast %4 : vector<1x16x32xf32> to vector<16x32xf32>
    %c0_8 = arith.constant 0 : index
    %c0_9 = arith.constant 0 : index
    %6 = vector.load %arg4[%c0_8, %c0_9] : memref<32x32xf32, #tpu.memory_space<vmem>>, vector<32x32xf32>
    %cst = arith.constant dense<0.000000e+00> : vector<16x32xf32>
    %7 = tpu.matmul %1, %6, %cst {dimension_numbers = #tpu.dot_dimension_numbers<[1], [0], [0], [1], [0, 0, 1, 1], [], []>} : vector<16x32xf32>, vector<32x32xf32>, vector<16x32xf32> -> vector<16x32xf32>
    %c0_10 = arith.constant 0 : index
    %c0_11 = arith.constant 0 : index
    %8 = vector.load %arg5[%c0_10, %c0_11] : memref<1x32xf32, #tpu.memory_space<vmem>>, vector<1x32xf32>
    %9 = vector.broadcast %8 : vector<1x32xf32> to vector<16x32xf32>
    %10 = arith.addf %7, %9 : vector<16x32xf32>
    %cst_12 = arith.constant 0.000000e+00 : f32
    %11 = vector.broadcast %cst_12 : f32 to vector<16x32xf32>
    %12 = arith.maximumf %10, %11 : vector<16x32xf32>
    %c0_13 = arith.constant 0 : index
    %c0_14 = arith.constant 0 : index
    %13 = vector.load %arg6[%c0_13, %c0_14] : memref<32x32xf32, #tpu.memory_space<vmem>>, vector<32x32xf32>
    %cst_15 = arith.constant dense<0.000000e+00> : vector<16x32xf32>
    %14 = tpu.matmul %3, %13, %cst_15 {dimension_numbers = #tpu.dot_dimension_numbers<[1], [0], [0], [1], [0, 0, 1, 1], [], []>} : vector<16x32xf32>, vector<32x32xf32>, vector<16x32xf32> -> vector<16x32xf32>
    %c0_16 = arith.constant 0 : index
    %c0_17 = arith.constant 0 : index
    %15 = vector.load %arg7[%c0_16, %c0_17] : memref<1x32xf32, #tpu.memory_space<vmem>>, vector<1x32xf32>
    %16 = vector.broadcast %15 : vector<1x32xf32> to vector<16x32xf32>
    %17 = arith.addf %14, %16 : vector<16x32xf32>
    %cst_18 = arith.constant 0.000000e+00 : f32
    %18 = vector.broadcast %cst_18 : f32 to vector<16x32xf32>
    %19 = arith.maximumf %17, %18 : vector<16x32xf32>
    %c0_19 = arith.constant 0 : index
    %c0_20 = arith.constant 0 : index
    %20 = vector.load %arg8[%c0_19, %c0_20] : memref<32x32xf32, #tpu.memory_space<vmem>>, vector<32x32xf32>
    %cst_21 = arith.constant dense<0.000000e+00> : vector<16x32xf32>
    %21 = tpu.matmul %5, %20, %cst_21 {dimension_numbers = #tpu.dot_dimension_numbers<[1], [0], [0], [1], [0, 0, 1, 1], [], []>} : vector<16x32xf32>, vector<32x32xf32>, vector<16x32xf32> -> vector<16x32xf32>
    %c0_22 = arith.constant 0 : index
    %c0_23 = arith.constant 0 : index
    %22 = vector.load %arg9[%c0_22, %c0_23] : memref<1x32xf32, #tpu.memory_space<vmem>>, vector<1x32xf32>
    %23 = vector.broadcast %22 : vector<1x32xf32> to vector<16x32xf32>
    %24 = arith.addf %21, %23 : vector<16x32xf32>
    %cst_24 = arith.constant 0.000000e+00 : f32
    %25 = vector.broadcast %cst_24 : f32 to vector<16x32xf32>
    %26 = arith.maximumf %24, %25 : vector<16x32xf32>
    %cst_25 = arith.constant dense<0.000000e+00> : vector<16xf32>
    %27 = vector.multi_reduction <add>, %1, %cst_25 [1] : vector<16x32xf32> to vector<16xf32>
    %28 = vector.shape_cast %27 : vector<16xf32> to vector<16x1xf32>
    %29 = math.absf %28 : vector<16x1xf32>
    %cst_26 = arith.constant 0.000000e+00 : f32
    %30 = vector.broadcast %cst_26 : f32 to vector<16x1xf32>
    %31 = arith.cmpf ogt, %29, %30 : vector<16x1xf32>
    %32 = arith.extui %31 : vector<16x1xi1> to vector<16x1xi32>
    %33 = arith.sitofp %32 : vector<16x1xi32> to vector<16x1xf32>
    %34 = vector.extract_strided_slice %12 {offsets = [0, 0], sizes = [16, 8], strides = [1, 1]} : vector<16x32xf32> to vector<16x8xf32>
    %35 = vector.extract_strided_slice %19 {offsets = [0, 0], sizes = [16, 8], strides = [1, 1]} : vector<16x32xf32> to vector<16x8xf32>
    %36 = tpu.transpose %35, [1, 0] : vector<16x8xf32> -> vector<8x16xf32>
    %cst_27 = arith.constant dense<0.000000e+00> : vector<16x16xf32>
    %37 = tpu.matmul %34, %36, %cst_27 {dimension_numbers = #tpu.dot_dimension_numbers<[1], [0], [0], [1], [0, 0, 1, 1], [], []>} : vector<16x8xf32>, vector<8x16xf32>, vector<16x16xf32> -> vector<16x16xf32>
    %cst_28 = arith.constant 0.353553385 : f32
    %38 = vector.broadcast %cst_28 : f32 to vector<16x16xf32>
    %39 = arith.mulf %37, %38 : vector<16x16xf32>
    %cst_29 = arith.constant dense<0xFF800000> : vector<16xf32>
    %40 = vector.multi_reduction <maximumf>, %39, %cst_29 [1] : vector<16x16xf32> to vector<16xf32>
    %41 = vector.shape_cast %40 : vector<16xf32> to vector<16x1xf32>
    %42 = vector.broadcast %41 : vector<16x1xf32> to vector<16x16xf32>
    %43 = arith.subf %39, %42 : vector<16x16xf32>
    %44 = math.exp %43 : vector<16x16xf32>
    %cst_30 = arith.constant dense<0.000000e+00> : vector<16xf32>
    %45 = vector.multi_reduction <add>, %44, %cst_30 [1] : vector<16x16xf32> to vector<16xf32>
    %46 = vector.shape_cast %45 : vector<16xf32> to vector<16x1xf32>
    %47 = tpu.reciprocal %46 {approx = true} : vector<16x1xf32> -> vector<16x1xf32>
    %48 = vector.broadcast %47 : vector<16x1xf32> to vector<16x16xf32>
    %49 = arith.mulf %44, %48 : vector<16x16xf32>
    %50 = vector.broadcast %33 : vector<16x1xf32> to vector<16x16xf32>
    %51 = arith.mulf %49, %50 : vector<16x16xf32>
    %52 = vector.extract_strided_slice %26 {offsets = [0, 0], sizes = [16, 8], strides = [1, 1]} : vector<16x32xf32> to vector<16x8xf32>
    %cst_31 = arith.constant dense<0.000000e+00> : vector<16x8xf32>
    %53 = tpu.matmul %51, %52, %cst_31 {dimension_numbers = #tpu.dot_dimension_numbers<[1], [0], [0], [1], [0, 0, 1, 1], [], []>} : vector<16x16xf32>, vector<16x8xf32>, vector<16x8xf32> -> vector<16x8xf32>
    %54 = vector.extract_strided_slice %12 {offsets = [0, 8], sizes = [16, 8], strides = [1, 1]} : vector<16x32xf32> to vector<16x8xf32>
    %55 = vector.extract_strided_slice %19 {offsets = [0, 8], sizes = [16, 8], strides = [1, 1]} : vector<16x32xf32> to vector<16x8xf32>
    %56 = tpu.transpose %55, [1, 0] : vector<16x8xf32> -> vector<8x16xf32>
    %cst_32 = arith.constant dense<0.000000e+00> : vector<16x16xf32>
    %57 = tpu.matmul %54, %56, %cst_32 {dimension_numbers = #tpu.dot_dimension_numbers<[1], [0], [0], [1], [0, 0, 1, 1], [], []>} : vector<16x8xf32>, vector<8x16xf32>, vector<16x16xf32> -> vector<16x16xf32>
    %cst_33 = arith.constant 0.353553385 : f32
    %58 = vector.broadcast %cst_33 : f32 to vector<16x16xf32>
    %59 = arith.mulf %57, %58 : vector<16x16xf32>
    %cst_34 = arith.constant dense<0xFF800000> : vector<16xf32>
    %60 = vector.multi_reduction <maximumf>, %59, %cst_34 [1] : vector<16x16xf32> to vector<16xf32>
    %61 = vector.shape_cast %60 : vector<16xf32> to vector<16x1xf32>
    %62 = vector.broadcast %61 : vector<16x1xf32> to vector<16x16xf32>
    %63 = arith.subf %59, %62 : vector<16x16xf32>
    %64 = math.exp %63 : vector<16x16xf32>
    %cst_35 = arith.constant dense<0.000000e+00> : vector<16xf32>
    %65 = vector.multi_reduction <add>, %64, %cst_35 [1] : vector<16x16xf32> to vector<16xf32>
    %66 = vector.shape_cast %65 : vector<16xf32> to vector<16x1xf32>
    %67 = tpu.reciprocal %66 {approx = true} : vector<16x1xf32> -> vector<16x1xf32>
    %68 = vector.broadcast %67 : vector<16x1xf32> to vector<16x16xf32>
    %69 = arith.mulf %64, %68 : vector<16x16xf32>
    %70 = vector.broadcast %33 : vector<16x1xf32> to vector<16x16xf32>
    %71 = arith.mulf %69, %70 : vector<16x16xf32>
    %72 = vector.extract_strided_slice %26 {offsets = [0, 8], sizes = [16, 8], strides = [1, 1]} : vector<16x32xf32> to vector<16x8xf32>
    %cst_36 = arith.constant dense<0.000000e+00> : vector<16x8xf32>
    %73 = tpu.matmul %71, %72, %cst_36 {dimension_numbers = #tpu.dot_dimension_numbers<[1], [0], [0], [1], [0, 0, 1, 1], [], []>} : vector<16x16xf32>, vector<16x8xf32>, vector<16x8xf32> -> vector<16x8xf32>
    %74 = vector.extract_strided_slice %12 {offsets = [0, 16], sizes = [16, 8], strides = [1, 1]} : vector<16x32xf32> to vector<16x8xf32>
    %75 = vector.extract_strided_slice %19 {offsets = [0, 16], sizes = [16, 8], strides = [1, 1]} : vector<16x32xf32> to vector<16x8xf32>
    %76 = tpu.transpose %75, [1, 0] : vector<16x8xf32> -> vector<8x16xf32>
    %cst_37 = arith.constant dense<0.000000e+00> : vector<16x16xf32>
    %77 = tpu.matmul %74, %76, %cst_37 {dimension_numbers = #tpu.dot_dimension_numbers<[1], [0], [0], [1], [0, 0, 1, 1], [], []>} : vector<16x8xf32>, vector<8x16xf32>, vector<16x16xf32> -> vector<16x16xf32>
    %cst_38 = arith.constant 0.353553385 : f32
    %78 = vector.broadcast %cst_38 : f32 to vector<16x16xf32>
    %79 = arith.mulf %77, %78 : vector<16x16xf32>
    %cst_39 = arith.constant dense<0xFF800000> : vector<16xf32>
    %80 = vector.multi_reduction <maximumf>, %79, %cst_39 [1] : vector<16x16xf32> to vector<16xf32>
    %81 = vector.shape_cast %80 : vector<16xf32> to vector<16x1xf32>
    %82 = vector.broadcast %81 : vector<16x1xf32> to vector<16x16xf32>
    %83 = arith.subf %79, %82 : vector<16x16xf32>
    %84 = math.exp %83 : vector<16x16xf32>
    %cst_40 = arith.constant dense<0.000000e+00> : vector<16xf32>
    %85 = vector.multi_reduction <add>, %84, %cst_40 [1] : vector<16x16xf32> to vector<16xf32>
    %86 = vector.shape_cast %85 : vector<16xf32> to vector<16x1xf32>
    %87 = tpu.reciprocal %86 {approx = true} : vector<16x1xf32> -> vector<16x1xf32>
    %88 = vector.broadcast %87 : vector<16x1xf32> to vector<16x16xf32>
    %89 = arith.mulf %84, %88 : vector<16x16xf32>
    %90 = vector.broadcast %33 : vector<16x1xf32> to vector<16x16xf32>
    %91 = arith.mulf %89, %90 : vector<16x16xf32>
    %92 = vector.extract_strided_slice %26 {offsets = [0, 16], sizes = [16, 8], strides = [1, 1]} : vector<16x32xf32> to vector<16x8xf32>
    %cst_41 = arith.constant dense<0.000000e+00> : vector<16x8xf32>
    %93 = tpu.matmul %91, %92, %cst_41 {dimension_numbers = #tpu.dot_dimension_numbers<[1], [0], [0], [1], [0, 0, 1, 1], [], []>} : vector<16x16xf32>, vector<16x8xf32>, vector<16x8xf32> -> vector<16x8xf32>
    %94 = vector.extract_strided_slice %12 {offsets = [0, 24], sizes = [16, 8], strides = [1, 1]} : vector<16x32xf32> to vector<16x8xf32>
    %95 = vector.extract_strided_slice %19 {offsets = [0, 24], sizes = [16, 8], strides = [1, 1]} : vector<16x32xf32> to vector<16x8xf32>
    %96 = tpu.transpose %95, [1, 0] : vector<16x8xf32> -> vector<8x16xf32>
    %cst_42 = arith.constant dense<0.000000e+00> : vector<16x16xf32>
    %97 = tpu.matmul %94, %96, %cst_42 {dimension_numbers = #tpu.dot_dimension_numbers<[1], [0], [0], [1], [0, 0, 1, 1], [], []>} : vector<16x8xf32>, vector<8x16xf32>, vector<16x16xf32> -> vector<16x16xf32>
    %cst_43 = arith.constant 0.353553385 : f32
    %98 = vector.broadcast %cst_43 : f32 to vector<16x16xf32>
    %99 = arith.mulf %97, %98 : vector<16x16xf32>
    %cst_44 = arith.constant dense<0xFF800000> : vector<16xf32>
    %100 = vector.multi_reduction <maximumf>, %99, %cst_44 [1] : vector<16x16xf32> to vector<16xf32>
    %101 = vector.shape_cast %100 : vector<16xf32> to vector<16x1xf32>
    %102 = vector.broadcast %101 : vector<16x1xf32> to vector<16x16xf32>
    %103 = arith.subf %99, %102 : vector<16x16xf32>
    %104 = math.exp %103 : vector<16x16xf32>
    %cst_45 = arith.constant dense<0.000000e+00> : vector<16xf32>
    %105 = vector.multi_reduction <add>, %104, %cst_45 [1] : vector<16x16xf32> to vector<16xf32>
    %106 = vector.shape_cast %105 : vector<16xf32> to vector<16x1xf32>
    %107 = tpu.reciprocal %106 {approx = true} : vector<16x1xf32> -> vector<16x1xf32>
    %108 = vector.broadcast %107 : vector<16x1xf32> to vector<16x16xf32>
    %109 = arith.mulf %104, %108 : vector<16x16xf32>
    %110 = vector.broadcast %33 : vector<16x1xf32> to vector<16x16xf32>
    %111 = arith.mulf %109, %110 : vector<16x16xf32>
    %112 = vector.extract_strided_slice %26 {offsets = [0, 24], sizes = [16, 8], strides = [1, 1]} : vector<16x32xf32> to vector<16x8xf32>
    %cst_46 = arith.constant dense<0.000000e+00> : vector<16x8xf32>
    %113 = tpu.matmul %111, %112, %cst_46 {dimension_numbers = #tpu.dot_dimension_numbers<[1], [0], [0], [1], [0, 0, 1, 1], [], []>} : vector<16x16xf32>, vector<16x8xf32>, vector<16x8xf32> -> vector<16x8xf32>
    %114 = tpu.concatenate %53, %73, %93, %113 in 1 : vector<16x8xf32>, vector<16x8xf32>, vector<16x8xf32>, vector<16x8xf32> -> vector<16x32xf32>
    %115 = arith.addf %114, %1 : vector<16x32xf32>
    %c0_47 = arith.constant 0 : index
    %c0_48 = arith.constant 0 : index
    %c0_49 = arith.constant 0 : index
    %116 = vector.load %arg10[%c0_47, %c0_48, %c0_49] : memref<1x16x32xf32, #tpu.memory_space<vmem>>, vector<1x16x32xf32>
    %117 = vector.shape_cast %116 : vector<1x16x32xf32> to vector<16x32xf32>
    %118 = vector.shape_cast %115 : vector<16x32xf32> to vector<1x16x32xf32>
    tpu.vector_store %arg10[%c0_47, %c0_48, %c0_49], %118 {strides = array<i32>} : memref<1x16x32xf32, #tpu.memory_space<vmem>>, vector<1x16x32xf32>,
    return
  }
  func.func @transform_0(%arg0: i32) -> (i32, i32, i32) {
    %c0_i32 = arith.constant 0 : i32
    %c0_i32_0 = arith.constant 0 : i32
    %c0_i32_1 = arith.constant 0 : i32
    return %arg0, %c0_i32, %c0_i32_0 : i32, i32, i32
  }
  func.func @transform_1(%arg0: i32) -> (i32, i32, i32) {
    %c0_i32 = arith.constant 0 : i32
    %c0_i32_0 = arith.constant 0 : i32
    %c0_i32_1 = arith.constant 0 : i32
    return %arg0, %c0_i32, %c0_i32_0 : i32, i32, i32
  }
  func.func @transform_2(%arg0: i32) -> (i32, i32, i32) {
    %c0_i32 = arith.constant 0 : i32
    %c0_i32_0 = arith.constant 0 : i32
    %c0_i32_1 = arith.constant 0 : i32
    return %arg0, %c0_i32, %c0_i32_0 : i32, i32, i32
  }
  func.func @transform_3(%arg0: i32) -> (i32, i32) {
    %c0_i32 = arith.constant 0 : i32
    %c0_i32_0 = arith.constant 0 : i32
    %c0_i32_1 = arith.constant 0 : i32
    return %c0_i32, %c0_i32_0 : i32, i32
  }
  func.func @transform_4(%arg0: i32) -> (i32, i32) {
    %c0_i32 = arith.constant 0 : i32
    %c0_i32_0 = arith.constant 0 : i32
    %c0_i32_1 = arith.constant 0 : i32
    return %c0_i32, %c0_i32_0 : i32, i32
  }
  func.func @transform_5(%arg0: i32) -> (i32, i32) {
    %c0_i32 = arith.constant 0 : i32
    %c0_i32_0 = arith.constant 0 : i32
    %c0_i32_1 = arith.constant 0 : i32
    return %c0_i32, %c0_i32_0 : i32, i32
  }
  func.func @transform_6(%arg0: i32) -> (i32, i32) {
    %c0_i32 = arith.constant 0 : i32
    %c0_i32_0 = arith.constant 0 : i32
    %c0_i32_1 = arith.constant 0 : i32
    return %c0_i32, %c0_i32_0 : i32, i32
  }
  func.func @transform_7(%arg0: i32) -> (i32, i32) {
    %c0_i32 = arith.constant 0 : i32
    %c0_i32_0 = arith.constant 0 : i32
    %c0_i32_1 = arith.constant 0 : i32
    return %c0_i32, %c0_i32_0 : i32, i32
  }
  func.func @transform_8(%arg0: i32) -> (i32, i32) {
    %c0_i32 = arith.constant 0 : i32
    %c0_i32_0 = arith.constant 0 : i32
    %c0_i32_1 = arith.constant 0 : i32
    return %c0_i32, %c0_i32_0 : i32, i32
  }
  func.func @transform_9(%arg0: i32) -> (i32, i32, i32) {
    %c0_i32 = arith.constant 0 : i32
    %c0_i32_0 = arith.constant 0 : i32
    %c0_i32_1 = arith.constant 0 : i32
    return %arg0, %c0_i32, %c0_i32_0 : i32, i32, i32
  }
}

</mosaic_0001>

<bundles_post_ra>
// kernel: tpu_custom_call.1
= control target key start
LH: loop header
LB: loop body
LE: loop exit
PB: predicated region body
PF: predicated region fallthrough
CT: control target
= control target key end

     0   :  { %s2116_s0 = inlined_call_operand.hbm [shape: f32[2,16,32], index: 0, kind: input, shape index: {}]   ;;  %s2117_s1 = inlined_call_operand.hbm [shape: f32[2,16,32], index: 1, kind: input, shape index: {}]   ;;  %s2118_s2 = inlined_call_operand.hbm [shape: f32[2,16,32], index: 2, kind: input, shape index: {}]   ;;  %s2119_s3 = inlined_call_operand.hbm [shape: f32[32,32], index: 3, kind: input, shape index: {}]   ;;  %s2120_s4 = inlined_call_operand.vmem [shape: f32[1,32], index: 4, kind: input, shape index: {}]   ;;  %s2121_s5 = inlined_call_operand.hbm [shape: f32[32,32], index: 5, kind: input, shape index: {}]   ;;  %s2122_s6 = inlined_call_operand.vmem [shape: f32[1,32], index: 6, kind: input, shape index: {}]   ;;  %s2123_s7 = inlined_call_operand.hbm [shape: f32[32,32], index: 7, kind: input, shape index: {}]   ;;  %s2124_s8 = inlined_call_operand.vmem [shape: f32[1,32], index: 8, kind: input, shape index: {}]   ;;  %s2125_s9 = inlined_call_operand.hbm [shape: f32[2,16,32], index: 9, kind: output, shape index: {}]  }
   0x1   :  { %2140 = sst [smem:[#allocation25_spill]] %s2117_s1 }
   0x2   :  { %2141 = sst [smem:[#allocation26_spill]] %s2119_s3 }
   0x3   :  { %2142 = sst [smem:[#allocation27_spill]] %s2125_s9 }
   0x4   :  { %14 = vsyncpa [#allocation3], 0 }
   0x5   :  { %16 = vsyncpa [#allocation3 + $0x1], 0 }
   0x6   :  { %17 = vsyncpa [#allocation6], 0 }
   0x7   :  { %19 = vsyncpa [#allocation6 + $0x1], 0 }
   0x8   :  { %20 = vsyncpa [#allocation9], 0 }
   0x9   :  { %21 = vsyncpa [#allocation12], 0 }
   0xa   :  { %22 = vsyncpa [#allocation4], 0 }
   0xb   :  { %24 = vsyncpa [#allocation4 + $0x1], 0  ;;  %s1750_s30 = smov 0   ;;  %s1752_s10 = smov 0  }
   0xc   :  { %s1754_s11 = smov 0   ;;  %s1756_s12 = smov 0  }
   0xd LB: > { %2143 = sst [smem:[#allocation19_spill]] %s1673_s30  ;;  %s1771_s13 = sadd.s32 4294967295, %s1685_s12   ;;  %s1685_s12 = sphi %s1756_s12, %s2170_s12   ;;  %s1681_s11 = sphi %s1754_s11, %s2174_s11   ;;  %s1677_s10 = sphi %s1752_s10, %s2173_s10   ;;  %s1673_s30 = sphi %s1750_s30, %s2172_s30  }
   0xe   : > { %2144 = sst [smem:[#allocation20_spill]] %s1685_s12  ;;  %s1212_s14 = sadd.s32 4294967294, %s1685_s12  }
   0xf   : > { %p50_p0 = scmp.ne.s32.totalorder %s1677_s10, %s1673_s30  ;;  %p2139_p1 = scmp.eq.s32.totalorder %s1771_s13, 0 }
  0x10   : > { %p252_p2 = scmp.eq.s32.totalorder %s1771_s13, 1  ;;  %p258_p3 = scmp.eq.s32.totalorder %s1212_s14, 1 }
  0x11   : > { %p1780_p4 = por %p2139_p1, %p50_p0  ;;  %p1213_p5 = scmp.ge.s32.totalorder %s1685_s12, 1 }
  0x12   : > { %p1785_p6 = por %p258_p3, %p50_p0  ;;  %p265_p7 = scmp.lt.s32.totalorder %s1685_s12, 3 }
  0x13   : > { %s2148_s3 = sld [smem:[#allocation26_spill]]  ;;  %s1687_s21 = smov [#allocation8]  }
  0x14   : > { %s2146_s16 = scalar_select %p1785_p6, 1, 0 }
  0x15   : > { %p1793_p8 = pnand %p1213_p5, %p265_p7  ;;  %s278_s22 = sshll.u32 %s1687_s21, 4  ;;  %s279_s22 = int_to_ptr.vmem [resolvable:$true] %s278_s22 }
  0x16   : > { %2147 = sst [smem:[#allocation21_spill]] %s2146_s16  ;;  %s1807_s24 = sadd.s32 1, %s1685_s12  }
  0x17   : > { %p1300_p9 = pneg %p1793_p8  ;;  %2151 = sst [smem:[#allocation22_spill]] %s1807_s24 }
  0x18   : > { %s2126_s25 = smov 128   ;;  %s2128_s26 = smov 8  }
  0x19   : > { %s276_s19 = sshll.u32 %s2148_s3, 4  ;;  %p1801_p10 = pnand %p1300_p9, %p2139_p1  ;;  %s277_s19 = int_to_ptr.hbm [resolvable:$true] %s276_s19 }
  0x1a   : > { %s34_s27 = ssub.s32 %s1685_s12, %s1807_s24  ;;  %s37_s28 = sadd.s32 1, %s1681_s11 }
  0x1b   : > { %1303 = dma.hbm_to_vmem [thread:$0]  (!%p1801_p10), %s277_s19, 512, %s279_s22, [#allocation9], %s2126_s25, %s2126_s25, %s2128_s26  }
  0x1c   : > { %p35_p12 = scmp.eq.s32.totalorder %s34_s27, 0  ;;  %p44_p13 = scmp.ne.s32.totalorder %s1681_s11, %s1677_s10 }
  0x1d   : > { %p45_p0 = scmp.eq.s32.totalorder %s1685_s12, 0  ;;  %p1327_p3 = scmp.lt.s32.totalorder %s1685_s12, 2 }
  0x1e   : > { %s1822_s29 = scalar_select %p35_p12, %s1681_s11, %s37_s28  }
  0x1f   : > { %p46_p5 = por %p45_p0, %p44_p13  ;;  %p1826_p7 = por %p252_p2, %p44_p13 }
  0x20   : > { %2152 = sst [smem:[#allocation23_spill]] %s1822_s29  ;;  %s2132_s17 = sand.u32 1, %s1681_s11  }
  0x21   : > { %s2153_s14 = scalar_select %p1826_p7, 1, 0 }
  0x22   : > { %s1832_s18 = sshll.u32 %s1685_s12, 4  ;;  %s1836_s19 = sshll.u32 %s2132_s17, 4 }
  0x23   : > { %2154 = sst [smem:[#allocation24_spill]] %s2153_s14  ;;  %p1838_p9 = pnand %p1327_p3, %p46_p5 }
  0x24   : > { %s351_s22 = sand.u32 1, %s1685_s12   ;;  %s2156_s1 = sld [smem:[#allocation25_spill]] }
  0x25   : > { %s355_s26 = scalar_lea.vmem [#allocation5], %s1836_s19  ;;  %s293_s16 = sshll.u32 %s2121_s5, 4  ;;  %s294_s16 = int_to_ptr.hbm [resolvable:$true] %s293_s16 }
  0x26   : > { %s363_s3 = sshll.u32 %s355_s26, 4  ;;  %s1851_s30 = scalar_lea.sflag [#allocation6], %s351_s22  ;;  %s364_s3 = int_to_ptr.vmem [resolvable:$true] %s363_s3 }
  0x27   : > { %p1461_p12 = pneg %p1838_p9 }
  0x2a   : > { %s360_s25 = scalar_lea.hbm %s2156_s1, %s1832_s18  ;;  %s1464_s27 = scalar_lea.hbm %s2156_s1, 32 }
  0x2b   : > { %s361_s29 = sshll.u32 %s360_s25, 4  ;;  %s362_s29 = int_to_ptr.hbm [resolvable:$true] %s361_s29 }
  0x2c   : > { %s1457_s14 = sshra.s32 %s362_s29, 4  ;;  %s1458_s14 = int_to_ptr.hbm [resolvable:$true] %s1457_s14 }
  0x2d   : > { %s1459_s9 = scalar_lea.hbm %s1458_s14, 16  ;;  %p1465_p3 = scmp.lt.s32.totalorder %s1458_s14, %s2156_s1 }
  0x2e   : > { %p1460_p2 = scmp.ne.s32.totalorder %s1458_s14, %s1459_s9  ;;  %p1466_p5 = scmp.lt.s32.totalorder %s1464_s27, %s1459_s9 }
  0x30   : > { %p1462_p13 = pnand %p1461_p12, %p1460_p2  ;;  %p1467_p11 = por %p1466_p5, %p1465_p3 }
  0x32   : > { %p1463_p0 = pneg %p1462_p13 }
  0x34   : > { %p1468_p1 = pnand %p1467_p11, %p1463_p0 }
  0x36   : > { %1471 = shalt.err (!%p1468_p1)
}
  0x37   : > { %s2157_s24 = smov 8   ;;  %s2158_s17 = smov 128  }
  0x38   : > { %1316 = dma.hbm_to_vmem [thread:$0]  (!%p1838_p9), %s362_s29, 256, %s364_s3, %s1851_s30, %s2158_s17, %s2158_s17, %s2157_s24  }
  0x39   : > { %s1690_s22 = smov [#allocation10]   ;;  %s310_s26 = sshll.u32 %s2123_s7, 4  ;;  %s311_s26 = int_to_ptr.hbm [resolvable:$true] %s310_s26 }
  0x3a   : > { %s295_s12 = sshll.u32 %s1690_s22, 4  ;;  %s1691_s25 = smov [#allocation11]   ;;  %s296_s12 = int_to_ptr.vmem [resolvable:$true] %s295_s12 }
  0x3b   : > { %1306 = dma.hbm_to_vmem [thread:$0]  (!%p1801_p10), %s294_s16, 512, %s296_s12, [#allocation9], %s2158_s17, %s2158_s17, %s2157_s24  }
  0x3c   : > { %s312_s27 = sshll.u32 %s1691_s25, 4  ;;  %s338_s28 = scalar_lea.hbm %s2116_s0, %s1832_s18  ;;  %s313_s27 = int_to_ptr.vmem [resolvable:$true] %s312_s27 }
  0x3d   : > { %1309 = dma.hbm_to_vmem [thread:$0]  (!%p1801_p10), %s311_s26, 512, %s313_s27, [#allocation12], %s2158_s17, %s2158_s17, %s2157_s24  }
  0x3e   : > { %s339_s22 = sshll.u32 %s338_s28, 4  ;;  %s333_s14 = scalar_lea.vmem [#allocation2], %s1836_s19  ;;  %s340_s22 = int_to_ptr.hbm [resolvable:$true] %s339_s22 }
  0x3f   : > { %s341_s9 = sshll.u32 %s333_s14, 4  ;;  %s2159_s1 = sand.u32 1, %s1681_s11   ;;  %s342_s9 = int_to_ptr.vmem [resolvable:$true] %s341_s9 }
  0x40   : > { %s330_s16 = scalar_lea.sflag [#allocation3], %s2159_s1  ;;  %s1547_s12 = sshra.s32 %s340_s22, 4  ;;  %s1548_s12 = int_to_ptr.hbm [resolvable:$true] %s1547_s12 }
  0x41   : > { %s1549_s25 = scalar_lea.hbm %s1548_s12, 16  ;;  %s1554_s29 = scalar_lea.hbm %s2116_s0, 32 }
  0x42   : > { %p1550_p1 = scmp.ne.s32.totalorder %s1548_s12, %s1549_s25  ;;  %p1555_p10 = scmp.lt.s32.totalorder %s1548_s12, %s2116_s0 }
  0x43   : > { %p1556_p13 = scmp.lt.s32.totalorder %s1554_s29, %s1549_s25 }
  0x44   : > { %p1552_p11 = pnand %p1550_p1, %p1461_p12 }
  0x45   : > { %p1557_p0 = por %p1556_p13, %p1555_p10 }
  0x46   : > { %p1553_p2 = pneg %p1552_p11 }
  0x48   : > { %p1558_p3 = pnand %p1557_p0, %p1553_p2 }
  0x4a   : > { %1561 = shalt.err (!%p1558_p3)
}
  0x4b   : > { %1313 = dma.hbm_to_vmem [thread:$0]  (!%p1838_p9), %s340_s22, 256, %s342_s9, %s330_s16, %s2158_s17, %s2158_s17, %s2157_s24  }
  0x4c   : > { %s382_s14 = scalar_lea.hbm %s2118_s2, %s1832_s18  ;;  %s377_s3 = scalar_lea.vmem [#allocation7], %s1836_s19 }
  0x4d   : > { %s383_s23 = sshll.u32 %s382_s14, 4  ;;  %s385_s12 = sshll.u32 %s377_s3, 4  ;;  %s384_s23 = int_to_ptr.hbm [resolvable:$true] %s383_s23  ;;  %s386_s12 = int_to_ptr.vmem [resolvable:$true] %s385_s12 }
  0x4e   : > { %s1577_s25 = sshra.s32 %s384_s23, 4  ;;  %s1584_s22 = scalar_lea.hbm %s2118_s2, 32  ;;  %s1578_s25 = int_to_ptr.hbm [resolvable:$true] %s1577_s25 }
  0x4f   : > { %s1579_s29 = scalar_lea.hbm %s1578_s25, 16  ;;  %p1585_p2 = scmp.lt.s32.totalorder %s1578_s25, %s2118_s2 }
  0x50   : > { %p1580_p5 = scmp.ne.s32.totalorder %s1578_s25, %s1579_s29  ;;  %p1586_p10 = scmp.lt.s32.totalorder %s1584_s22, %s1579_s29 }
  0x52   : > { %p1582_p1 = pnand %p1580_p5, %p1461_p12  ;;  %p1587_p13 = por %p1586_p10, %p1585_p2 }
  0x54   : > { %p1583_p11 = pneg %p1582_p1 }
  0x56   : > { %p1588_p0 = pnand %p1587_p13, %p1583_p11 }
  0x58   : > { %1591 = shalt.err (!%p1588_p0)
}
  0x59   : > { %1319 = dma.hbm_to_vmem [thread:$0]  (!%p1838_p9), %s384_s23, 256, %s386_s12, %s1851_s30, %s2158_s17, %s2158_s17, %s2157_s24  }
  0x5a   : > { %397 = sbr.rel (%p1793_p8) target bundleno = 1078 (0x436), region = 56  ;;  %s1927_s18 = sand.u32 (!%p1793_p8), 1, %s1677_s10  }
  0x5b   : > { %s1930_s19 = sshll.u32 (!%p1793_p8), %s1927_s18, 4  ;;  %s400_s1 = scalar_lea.sflag (!%p1793_p8), [#allocation3], %s1927_s18 }
  0x5c   : > { %s403_s28 = scalar_lea.vmem (!%p1793_p8), [#allocation2], %s1930_s19 }
  0x5f   : > { %1652 = dma.done.wait (%p1780_p4), %s400_s1, 256  }
  0x60   : > { %1654 = vsyncadd (%p1780_p4), %s400_s1, 4294967040  ;;  %s409_s30 = sand.u32 1, %s1771_s13   ;;  %s413_s21 = scalar_lea.vmem [#allocation5], %s1930_s19 }
  0x61   : > { %s410_s20 = scalar_lea.sflag [#allocation6], %s409_s30 }
  0x62   : > { %1656 = dma.done.wait (%p1780_p4), %s410_s20, 512  }
  0x63   : > { %1658 = vsyncadd (%p1780_p4), %s410_s20, 4294966784  ;;  %s423_s24 = scalar_lea.vmem [#allocation7], %s1930_s19  ;;  %p2160_p8 = scmp.eq.s32.totalorder %s1771_s13, 0 }
  0x65   : > { %1660 = dma.done.wait (%p2160_p8), [#allocation9], 1024   ;;  %p2161_p9 = pmov %p2160_p8 }
  0x66   : > { %p2162_p12 = pmov %p2160_p8 }
  0x67   : > { %1662 = vsyncadd (%p2161_p9), [#allocation9], 4294966272 }
  0x68   : > { %1664 = dma.done.wait (%p2162_p12), [#allocation12], 512   ;;  %p2163_p3 = pmov %p2160_p8 }
  0x69   : > { %v493_v0 = vld [vmem:[#allocation8 + $0x18] sm:$0xff]  ;;  %v492_v2 = vld [vmem:[#allocation8 + $0x10] sm:$0xff]  ;;  %v491_v4 = vld [vmem:[#allocation8 + $0x8] sm:$0xff]  ;;  %vm498_vm0 = vcmask 261120   ;;  %s1692_s14 = smov 120   ;;  %vm622_vm1 = vcmask 64512  }
  0x6a   : > { %1666 = vsyncadd (%p2163_p3), [#allocation12], 4294966784  ;;  %v533_v1 = vld [vmem:[#allocation10 + $0x18] sm:$0xff]  ;;  %517 = vmatpush.msra.mxu0 %v493_v0  ;;  %v532_v3 = vld [vmem:[#allocation10 + $0x10] sm:$0xff]  ;;  %1276 = vmatpush.msra.mxu3 %v493_v0  ;;  %s1693_s12 = smov 112   ;;  %s1694_s25 = smov 104  }
  0x6b   : > { %556 = vmatpush.msra.mxu1 %v533_v1  ;;  %v531_v5 = vld [vmem:[#allocation10 + $0x8] sm:$0xff]  ;;  %v490_v6 = vld [vmem:[#allocation8] sm:$0xff]  ;;  %v572_v31 = vld [vmem:[#allocation11 + $0x18] sm:$0xff]  ;;  %vm660_vm2 = vcmask 130048   ;;  %s1696_s27 = smov 8   ;;  %s1697_s22 = smov 16  }
  0x6c   : > { %518 = vmatpush.msra.mxu0 %v492_v2  ;;  %1277 = vmatpush.msra.mxu3 %v492_v2  ;;  %v530_v7 = vld [vmem:[#allocation10] sm:$0xff]  ;;  %v1961_v10 = vld [vmem:[%s403_s28 + $0x8] sm:$0xff]  ;;  %v571_v32 = vld [vmem:[#allocation11 + $0x10] sm:$0xff]  ;;  %s1698_s9 = smov 24   ;;  %vm1044_vm5 = vcmask 195584   ;;  %s1275_s16 = sshll.u32 %s1771_s13, 4 }
  0x6d   : > { %557 = vmatpush.msra.mxu1 %v532_v3  ;;  %v1955_v8 = vld [vmem:[%s403_s28] sm:$0xff]  ;;  %v487_v11 = vld [vmem:[%s413_s21 + $0x8] sm:$0xff]  ;;  %595 = vmatpush.msra.mxu2 %v572_v31  ;;  %s483_s1 = scalar_lea.vmem [#allocation13], %s1930_s19  ;;  %s2164_s20 = sld [smem:[#allocation27_spill]] }
  0x6e   : > { %519 = vmatpush.msra.mxu0 %v491_v4  ;;  %v486_v9 = vld [vmem:[%s413_s21] sm:$0xff]  ;;  %1278 = vmatpush.msra.mxu3 %v491_v4  ;;  %v608_v28 = vsel %vm498_vm0, %v1955_v8, 0.0  ;;  %v570_v33 = vld [vmem:[#allocation11 + $0x8] sm:$0xff]  ;;  %s1064_s15 = sshll.u32 %s483_s1, 4  ;;  %s1052_s13 = scalar_lea.sflag [#allocation4], %s1927_s18  ;;  %s1065_s15 = int_to_ptr.vmem [resolvable:$true] %s1064_s15 }
  0x6f   : > { %558 = vmatpush.msra.mxu1 %v531_v5  ;;  %v1392_v12 = vld [vmem:[%s2120_s4] ss:$0 sm:$0xff]  ;;  %596 = vmatpush.msra.mxu2 %v571_v32  ;;  %v489_v40 = vld [vmem:[%s423_s24 + $0x8] sm:$0xff] }
  0x70   : > { %520 = vmatpush.msra.mxu0 %v490_v6  ;;  %1279 = vmatpush.msra.mxu3 %v490_v6  ;;  %v1393_v17 = vld [vmem:[%s2122_s6] ss:$0 sm:$0xff] }
  0x71   : > { %559 = vmatpush.msra.mxu1 %v530_v7  ;;  %1235 = vmatmul.msk.f32.vlgmr.msra.gmra.mxu0 %vm498_vm0, %v1955_v8  ;;  %v569_v35 = vld [vmem:[#allocation11] sm:$0xff] }
  0x72   : > { %1237 = vmatmul.msk.f32.vlgmr.msra.gmra.mxu1 %vm498_vm0, %v486_v9  ;;  %1236 = vmatmul.msk.f32.vlgmr.msra.gmra.mxu3 %vm498_vm0, %v1961_v10  ;;  %v488_v37 = vld [vmem:[%s423_s24] sm:$0xff] }
  0x73   : > { %597 = vmatpush.msra.mxu2 %v570_v33  ;;  %v1394_v5 = vld [vmem:[%s2124_s8] ss:$0 sm:$0xff]  ;;  %s1063_s21 = scalar_lea.hbm %s2164_s20, %s1275_s16 }
  0x74   : > { %s1066_s17 = sshll.u32 %s1063_s21, 4  ;;  %s1067_s17 = int_to_ptr.hbm [resolvable:$true] %s1066_s17 }
  0x75   : > { %598 = vmatpush.msra.mxu2 %v569_v35  ;;  %s1621_s19 = sshra.s32 %s1067_s17, 4  ;;  %s1622_s19 = int_to_ptr.hbm [resolvable:$true] %s1621_s19 }
  0x76   : > { %1239 = vmatmul.msk.f32.vlgmr.msra.gmra.mxu2 %vm498_vm0, %v488_v37  ;;  %p1628_p11 = scmp.lt.s32.totalorder %s1622_s19, %s2164_s20 }
  0x7a   : > { %1238 = vmatmul.msk.f32.gmra.mxu1 %vm498_vm0, %v487_v11 }
  0x7e   : > { %1240 = vmatmul.msk.f32.gmra.mxu2 %vm498_vm0, %v489_v40 }
  0xee   : > { %v522_v13 = vpop.f32.mrf.mxu0 }
  0xef   : > { %v561_v14 = vpop.f32.mrf.mxu1  ;;  %v523_v15 = vadd.f32 %v1392_v12, %v522_v13 }
  0xf0   : > { %v562_v24 = vadd.f32 %v1393_v17, %v561_v14 }
  0xf1   : > { %v528_v16 = vmax.f32 %v523_v15, 0.0 }
  0xf2   : > { %v567_v25 = vmax.f32 %v562_v24, 0.0 }
  0xf3   : > { %714 = vrot.lane.b32.xlu1 %v528_v16, %s1692_s14 }
  0xf5   : > { %v525_v18 = vpop.f32.mrf.mxu3 }
  0xf6   : > { %v526_v20 = vadd.f32 %v1392_v12, %v525_v18 }
  0xf7   : > { %v564_v19 = vpop.f32.mrf.mxu1 }
  0xf8   : > { %v565_v21 = vadd.f32 %v1393_v17, %v564_v19  ;;  %v529_v22 = vmax.f32 %v526_v20, 0.0 }
  0xf9   : > { %v600_v1 = vpop.f32.mrf.mxu2 }
  0xfa   : > { %v568_v23 = vmax.f32 %v565_v21, 0.0 }
  0xfb   : > { %716 = vrot.lane.b32.xlu1 %v529_v22, %s1692_s14 }
  0xfc   : > { %822 = vrot.lane.b32.xlu2 %v568_v23, %s1693_s12  ;;  %720 = vrot.lane.b32.xlu0 %v568_v23, %s1692_s14 }
  0xfd   : > { %1243 = vmatpush.xpose.msk.msrb.mxu3 %vm622_vm1, %v568_v23 }
 0x101   : > { %1244 = vmatpush.xpose.msk.msrb.mxu3 %vm622_vm1, %v567_v25  ;;  %v603_v14 = vpop.f32.mrf.mxu2 }
 0x102   : > { %v604_v17 = vadd.f32 %v1394_v5, %v603_v14 }
 0x103   : > { %920 = vrot.lane.b32.xlu1 %v567_v25, %s1694_s25 }
 0x104   : > { %1245 = vmatmul.msk.f32.vlgmr.msrb.gmra.mxu3 %vm622_vm1, %v528_v16  ;;  %922 = vrot.lane.b32.xlu2 %v568_v23, %s1694_s25  ;;  %v607_v20 = vmax.f32 %v604_v17, 0.0 }
 0x105   : > { %718 = vrot.lane.b32.xlu0 %v567_v25, %s1692_s14 }
 0x106   : > { %705 = vmatpush.msrb.mxu0 %v607_v20 }
 0x10b   : > { %818 = vrot.lane.b32.xlu1 %v529_v22, %s1693_s12 }
 0x10c   : > { %1246 = vmatmul.msk.f32.gmra.mxu3 %vm622_vm1, %v529_v22  ;;  %816 = vrot.lane.b32.xlu2 %v528_v16, %s1693_s12 }
 0x10d   : > { %820 = vrot.lane.b32.xlu0 %v567_v25, %s1693_s12  ;;  %v611_v25 = vsel %vm498_vm0, %v1961_v10, 0.0 }
 0x114   : > { %918 = vrot.lane.b32.xlu2 %v529_v22, %s1694_s25 }
 0x115   : > { %916 = vrot.lane.b32.xlu0 %v528_v16, %s1694_s25  ;;  %v601_v16 = vadd.f32 %v1394_v5, %v600_v1  ;;  %v1695_v1 = vmov 0.0  }
 0x117   : > { %v606_v21 = vmax.f32 %v601_v16, 0.0 }
 0x119   : > { %706 = vmatpush.msrb.mxu0 %v606_v21 }
 0x13d   : > { %609 = vadd.xlane.f32.xlu2 %v608_v28 }
 0x156   : > { %v823_v26 = vpop.permute.xlu2 %822 }
 0x157   : > { %1255 = vmatpush.xpose.msk.msra.mxu3 %vm622_vm1, %v823_v26  ;;  %v2033_v26 = vpack.i.bf16 %v606_v21, %v607_v20 }
 0x15e   : > { %v923_v36 = vpop.permute.xlu2 %922 }
 0x165   : > { %v715_v27 = vpop.permute.xlu1 %714 }
 0x166   : > { %v817_v41 = vpop.permute.xlu2 %816 }
 0x16d   : > { %v717_v30 = vpop.permute.xlu1 %716 }
 0x16e   : > { %v721_v29 = vpop.permute.xlu0 %720  ;;  %v919_v49 = vpop.permute.xlu2 %918 }
 0x16f   : > { %1249 = vmatpush.xpose.msk.msrb.mxu1 %vm622_vm1, %v721_v29 }
 0x175   : > { %v921_v38 = vpop.permute.xlu1 %920 }
 0x177   : > { %v719_v34 = vpop.permute.xlu0 %718 }
 0x178   : > { %1250 = vmatpush.xpose.msk.msrb.mxu1 %vm622_vm1, %v719_v34 }
 0x17b   : > { %1251 = vmatmul.msk.f32.vlgmr.msrb.gmra.mxu1 %vm622_vm1, %v715_v27 }
 0x17c   : > { %1261 = vmatpush.xpose.msk.msra.mxu1 %vm622_vm1, %v923_v36 }
 0x17d   : > { %v819_v44 = vpop.permute.xlu1 %818 }
 0x17f   : > { %v821_v39 = vpop.permute.xlu0 %820 }
 0x180   : > { %1262 = vmatpush.xpose.msk.msra.mxu1 %vm622_vm1, %v921_v38  ;;  %1256 = vmatpush.xpose.msk.msra.mxu3 %vm622_vm1, %v821_v39 }
 0x183   : > { %1252 = vmatmul.msk.f32.gmra.mxu1 %vm622_vm1, %v717_v30  ;;  %1257 = vmatmul.msk.f32.vlgmr.msra.gmra.mxu3 %vm622_vm1, %v817_v41 }
 0x187   : > { %v652_v42 = vpop.f32.mrf.mxu3  ;;  %v917_v45 = vpop.permute.xlu0 %916 }
 0x188   : > { %v658_v43 = vmul.f32 0.35355338, %v652_v42 }
 0x18a   : > { %v661_v46 = vsel %vm660_vm2, %v658_v43, -inf }
 0x18b   : > { %1258 = vmatmul.msk.f32.gmra.mxu3 %vm622_vm1, %v819_v44  ;;  %1263 = vmatmul.msk.f32.vlgmr.msra.gmra.mxu1 %vm622_vm1, %v917_v45 }
 0x18c   : > { %662 = vmax.xlane.f32.xlu1 %v661_v46 }
 0x18f   : > { %v655_v47 = vpop.f32.mrf.mxu3 }
 0x190   : > { %v659_v48 = vmul.f32 0.35355338, %v655_v47 }
 0x192   : > { %v664_v50 = vsel %vm660_vm2, %v659_v48, -inf }
 0x193   : > { %1264 = vmatmul.msk.f32.gmra.mxu1 %vm622_vm1, %v919_v49  ;;  %665 = vmax.xlane.f32.xlu2 %v664_v50 }
 0x1b0   : > { %v2016_v54 = vpop.xlane.xlu2 %609 }
 0x1f8   : > { %v747_v51 = vpop.f32.mrf.mxu1 }
 0x1f9   : > { %v753_v52 = vmul.f32 0.35355338, %v747_v51 }
 0x1fb   : > { %v755_v53 = vsel %vm660_vm2, %v753_v52, -inf }
 0x1fc   : > { %756 = vmax.xlane.f32.xlu0 %v755_v53 }
 0x1ff   : > { %v663_v2 = vpop.xlane.xlu1 %662 }
 0x200   : > { %v750_v55 = vpop.f32.mrf.mxu1  ;;  %v667_v6 = vsub.f32 %v658_v43, %v663_v2 }
 0x201   : > { %v754_v56 = vmul.f32 0.35355338, %v750_v55 }
 0x202   : > { %v669_v18 = vmul.f32 1.442695, %v667_v6 }
 0x203   : > { %v758_v57 = vsel %vm660_vm2, %v754_v56, -inf }
 0x204   : > { %759 = vmax.xlane.f32.xlu2 %v758_v57 }
 0x206   : > { %v849_v58 = vpop.f32.mrf.mxu3  ;;  %v666_v59 = vpop.xlane.xlu2 %665 }
 0x207   : > { %v855_v60 = vmul.f32 0.35355338, %v849_v58  ;;  %v668_v61 = vsub.f32 %v659_v48, %v666_v59 }
 0x208   : > { %v949_v62 = vpop.f32.mrf.mxu1 }
 0x209   : > { %v671_v63 = vmul.f32 1.442695, %v668_v61  ;;  %v857_v0 = vsel %vm660_vm2, %v855_v60, -inf  ;;  %v955_v19 = vmul.f32 0.35355338, %v949_v62 }
 0x20a   : > { %858 = vmax.xlane.f32.xlu1 %v857_v0 }
 0x20b   : > { %1395 = vpow2.f32 %v671_v63  ;;  %v957_v22 = vsel %vm660_vm2, %v955_v19, -inf }
 0x20c   : > { %1397 = vpow2.f32 %v669_v18 }
 0x20e   : > { %v852_v3 = vpop.f32.mrf.mxu3 }
 0x20f   : > { %v856_v4 = vmul.f32 0.35355338, %v852_v3 }
 0x210   : > { %v952_v7 = vpop.f32.mrf.mxu1 }
 0x211   : > { %v2023_v9 = vpop.eup %1395  ;;  %v956_v11 = vmul.f32 0.35355338, %v952_v7  ;;  %v860_v12 = vsel %vm660_vm2, %v856_v4, -inf }
 0x212   : > { %861 = vmax.xlane.f32.xlu0 %v860_v12  ;;  %v676_v13 = vsel %vm660_vm2, %v2023_v9, 0.0  ;;  %v1398_v23 = vpop.eup %1397 }
 0x213   : > { %677 = vadd.xlane.f32.xlu1 %v676_v13  ;;  %v960_v15 = vsel %vm660_vm2, %v956_v11, -inf  ;;  %v673_v24 = vsel %vm660_vm2, %v1398_v23, 0.0 }
 0x214   : > { %961 = vmax.xlane.f32.xlu2 %v960_v15 }
 0x21a   : > { %958 = vmax.xlane.f32.xlu0 %v957_v22 }
 0x222   : > { %674 = vadd.xlane.f32.xlu0 %v673_v24 }
 0x22a   : > { %612 = vadd.xlane.f32.xlu0 %v611_v25 }
 0x22c   : > { %1378 = vrot.lane.b32.xlu2 %v2033_v26, %s1692_s14  ;;  %s1623_s14 = scalar_lea.hbm %s1622_s19, 16 }
 0x22d   : > { %p1624_p4 = scmp.ne.s32.totalorder %s1622_s19, %s1623_s14 }
 0x22f   : > { %p1625_p5 = pnand %p1624_p4, %p1826_p7 }
 0x231   : > { %p1626_p1 = pneg %p1625_p5 }
 0x26f   : > { %v757_v27 = vpop.xlane.xlu0 %756 }
 0x270   : > { %v761_v28 = vsub.f32 %v753_v52, %v757_v27 }
 0x272   : > { %v763_v29 = vmul.f32 1.442695, %v761_v28 }
 0x274   : > { %1399 = vpow2.f32 %v763_v29 }
 0x277   : > { %v760_v32 = vpop.xlane.xlu2 %759 }
 0x278   : > { %v762_v35 = vsub.f32 %v754_v56, %v760_v32  ;;  %v614_v56 = vand.u32 2147483647, %v2016_v54 }
 0x27a   : > { %v2037_v30 = vpop.eup %1399  ;;  %v765_v37 = vmul.f32 1.442695, %v762_v35  ;;  %vm616_vm3 = vcmp.gt.f32.partialorder %v614_v56, 0.0 }
 0x27b   : > { %v767_v31 = vsel %vm660_vm2, %v2037_v30, 0.0  ;;  %v1241_v2 = vsel %vm616_vm3, 1.0, %v1695_v1 }
 0x27c   : > { %768 = vadd.xlane.f32.xlu1 %v767_v31 }
 0x27d   : > { %v859_v33 = vpop.xlane.xlu1 %858 }
 0x27e   : > { %v863_v34 = vsub.f32 %v855_v60, %v859_v33 }
 0x280   : > { %v865_v36 = vmul.f32 1.442695, %v863_v34 }
 0x282   : > { %1401 = vpow2.f32 %v865_v36 }
 0x283   : > { %1403 = vpow2.f32 %v765_v37 }
 0x285   : > { %v862_v38 = vpop.xlane.xlu0 %861 }
 0x286   : > { %v864_v39 = vsub.f32 %v856_v4, %v862_v38  ;;  %v678_v59 = vpop.xlane.xlu1 %677 }
 0x287   : > { %v962_v43 = vpop.xlane.xlu2 %961 }
 0x288   : > { %v2041_v40 = vpop.eup %1401  ;;  %v867_v41 = vmul.f32 1.442695, %v864_v39  ;;  %v964_v48 = vsub.f32 %v956_v11, %v962_v43 }
 0x289   : > { %v869_v42 = vsel %vm660_vm2, %v2041_v40, 0.0  ;;  %v1404_v45 = vpop.eup %1403 }
 0x28a   : > { %1405 = vpow2.f32 %v867_v41  ;;  %870 = vadd.xlane.f32.xlu1 %v869_v42  ;;  %v770_v51 = vsel %vm660_vm2, %v1404_v45, 0.0  ;;  %v967_v52 = vmul.f32 1.442695, %v964_v48 }
 0x28d   : > { %v959_v44 = vpop.xlane.xlu0 %958 }
 0x28e   : > { %v963_v46 = vsub.f32 %v955_v19, %v959_v44 }
 0x28f   : > { %v1379_v55 = vpop.permute.xlu2 %1378 }
 0x290   : > { %v2045_v47 = vpop.eup %1405  ;;  %v965_v49 = vmul.f32 1.442695, %v963_v46  ;;  %v1380_v57 = vunpack.i.l.bf16 %v1379_v55  ;;  %v1381_v12 = vunpack.i.h.bf16 %v1379_v55 }
 0x291   : > { %v872_v50 = vsel %vm660_vm2, %v2045_v47, 0.0 }
 0x292   : > { %1407 = vpow2.f32 %v965_v49  ;;  %873 = vadd.xlane.f32.xlu2 %v872_v50  ;;  %771 = vadd.xlane.f32.xlu1 %v770_v51 }
 0x293   : > { %807 = vmatpush.msrb.mxu2 %v1380_v57 }
 0x295   : > { %v675_v53 = vpop.xlane.xlu0 %674  ;;  %808 = vmatpush.msrb.mxu2 %v1381_v12 }
 0x296   : > { %1409 = vrcp.f32 %v675_v53 }
 0x297   : > { %1411 = vpow2.f32 %v967_v52 }
 0x298   : > { %v1408_v58 = vpop.eup %1407  ;;  %1413 = vrcp.f32 %v678_v59 }
 0x299   : > { %v969_v60 = vsel %vm660_vm2, %v1408_v58, 0.0 }
 0x29a   : > { %970 = vadd.xlane.f32.xlu0 %v969_v60 }
 0x29c   : > { %v1410_v61 = vpop.eup %1409 }
 0x29d   : > { %v681_v62 = vmul.f32 %v1410_v61, %v1398_v23  ;;  %v613_v63 = vpop.xlane.xlu0 %612  ;;  %v1412_v0 = vpop.eup %1411 }
 0x29e   : > { %v615_v3 = vand.u32 2147483647, %v613_v63  ;;  %v972_v54 = vsel %vm660_vm2, %v1412_v0, 0.0  ;;  %v1414_v5 = vpop.eup %1413 }
 0x29f   : > { %v683_v4 = vmul.f32 %v1241_v2, %v681_v62  ;;  %v682_v7 = vmul.f32 %v1414_v5, %v2023_v9 }
 0x2a0   : > { %vm617_vm4 = vcmp.gt.f32.partialorder %v615_v3, 0.0 }
 0x2a1   : > { %1247 = vmatmul.msk.f32.vlgmr.msrb.gmra.mxu0 %vm660_vm2, %v683_v4  ;;  %v1242_v6 = vsel %vm617_vm4, 1.0, %v1695_v1 }
 0x2a2   : > { %973 = vadd.xlane.f32.xlu0 %v972_v54  ;;  %v684_v11 = vmul.f32 %v1242_v6, %v682_v7 }
 0x2a9   : > { %1248 = vmatmul.msk.f32.gmra.mxu0 %vm660_vm2, %v684_v11 }
 0x2ab   : > { %1383 = vrot.lane.b32.xlu1 %v2033_v26, %s1694_s25 }
 0x2b6   : > { %1388 = vrot.lane.b32.xlu0 %v2033_v26, %s1693_s12  ;;  %s1627_s12 = scalar_lea.hbm %s2164_s20, 32 }
 0x2b7   : > { %p1629_p2 = scmp.lt.s32.totalorder %s1627_s12, %s1623_s14 }
 0x2b9   : > { %p1630_p10 = por %p1629_p2, %p1628_p11 }
 0x2bb   : > { %p1631_p13 = pnand %p1630_p10, %p1626_p1 }
 0x2ef   : > { %v769_v13 = vpop.xlane.xlu1 %768 }
 0x2f0   : > { %1415 = vrcp.f32 %v769_v13 }
 0x2f6   : > { %v1416_v14 = vpop.eup %1415 }
 0x2f7   : > { %v775_v15 = vmul.f32 %v1416_v14, %v2037_v30 }
 0x2f9   : > { %v777_v16 = vmul.f32 %v1241_v2, %v775_v15 }
 0x2fb   : > { %1253 = vmatmul.msk.f32.vlgmr.msrb.gmra.mxu2 %vm660_vm2, %v777_v16 }
 0x2fd   : > { %v871_v9 = vpop.xlane.xlu1 %870 }
 0x305   : > { %v772_v17 = vpop.xlane.xlu1 %771  ;;  %v874_v30 = vpop.xlane.xlu2 %873 }
 0x306   : > { %1417 = vrcp.f32 %v772_v17 }
 0x30c   : > { %v1418_v18 = vpop.eup %1417 }
 0x30d   : > { %v776_v19 = vmul.f32 %v1418_v18, %v1404_v45  ;;  %v971_v20 = vpop.xlane.xlu0 %970 }
 0x30e   : > { %1419 = vrcp.f32 %v971_v20 }
 0x30f   : > { %v778_v21 = vmul.f32 %v1242_v6, %v776_v19 }
 0x311   : > { %1254 = vmatmul.msk.f32.gmra.mxu2 %vm660_vm2, %v778_v21 }
 0x314   : > { %v1420_v23 = vpop.eup %1419 }
 0x315   : > { %v974_v22 = vpop.xlane.xlu0 %973  ;;  %v977_v24 = vmul.f32 %v1420_v23, %v1408_v58 }
 0x316   : > { %1421 = vrcp.f32 %v974_v22 }
 0x317   : > { %1423 = vrcp.f32 %v871_v9  ;;  %v979_v28 = vmul.f32 %v1241_v2, %v977_v24 }
 0x318   : > { %1425 = vrcp.f32 %v874_v30 }
 0x31c   : > { %v1422_v29 = vpop.eup %1421 }
 0x31d   : > { %v1384_v25 = vpop.permute.xlu1 %1383  ;;  %v1424_v31 = vpop.eup %1423  ;;  %v978_v32 = vmul.f32 %v1422_v29, %v1412_v0 }
 0x31e   : > { %v1385_v26 = vunpack.i.l.bf16 %v1384_v25  ;;  %v1386_v27 = vunpack.i.h.bf16 %v1384_v25  ;;  %v877_v33 = vmul.f32 %v1424_v31, %v2041_v40  ;;  %v1426_v39 = vpop.eup %1425  ;;  %v708_v44 = vpop.f32.mrf.mxu0 }
 0x31f   : > { %v980_v36 = vmul.f32 %v1242_v6, %v978_v32  ;;  %v878_v41 = vmul.f32 %v1426_v39, %v2045_v47 }
 0x320   : > { %1007 = vmatpush.msra.mxu2 %v1385_v26  ;;  %v879_v38 = vmul.f32 %v1241_v2, %v877_v33 }
 0x321   : > { %v880_v42 = vmul.f32 %v1242_v6, %v878_v41 }
 0x322   : > { %1008 = vmatpush.msra.mxu2 %v1386_v27 }
 0x323   : > { %1265 = vmatmul.msk.f32.vlgmr.msra.gmra.mxu2 %vm660_vm2, %v979_v28 }
 0x326   : > { %v711_v45 = vpop.f32.mrf.mxu0 }
 0x328   : > { %v1389_v34 = vpop.permute.xlu0 %1388 }
 0x329   : > { %v1390_v35 = vunpack.i.l.bf16 %v1389_v34  ;;  %v1391_v37 = vunpack.i.h.bf16 %v1389_v34 }
 0x32b   : > { %907 = vmatpush.msra.mxu0 %v1390_v35  ;;  %1266 = vmatmul.msk.f32.gmra.mxu2 %vm660_vm2, %v980_v36 }
 0x32d   : > { %908 = vmatpush.msra.mxu0 %v1391_v37 }
 0x32e   : > { %1259 = vmatmul.msk.f32.vlgmr.msra.gmra.mxu0 %vm660_vm2, %v879_v38 }
 0x336   : > { %1260 = vmatmul.msk.f32.gmra.mxu0 %vm660_vm2, %v880_v42 }
 0x37e   : > { %v810_v43 = vpop.f32.mrf.mxu2 }
 0x37f   : > { %1018 = vrot.lane.b32.xlu1 %v810_v43, %s1696_s27 }
 0x394   : > { %v813_v40 = vpop.f32.mrf.mxu2 }
 0x395   : > { %1020 = vrot.lane.b32.xlu0 %v813_v40, %s1696_s27 }
 0x3a6   : > { %v1010_v48 = vpop.f32.mrf.mxu2 }
 0x3ab   : > { %v910_v46 = vpop.f32.mrf.mxu0 }
 0x3ac   : > { %1026 = vrot.lane.b32.xlu1 %v910_v46, %s1697_s22 }
 0x3ae   : > { %v1013_v47 = vpop.f32.mrf.mxu2 }
 0x3b3   : > { %v913_v49 = vpop.f32.mrf.mxu0 }
 0x3b4   : > { %1028 = vrot.lane.b32.xlu0 %v913_v49, %s1697_s22  ;;  %1034 = vrot.lane.b32.xlu1 %v1010_v48, %s1698_s9 }
 0x3bc   : > { %1036 = vrot.lane.b32.xlu0 %v1013_v47, %s1698_s9 }
 0x3f1   : > { %v1019_v50 = vpop.permute.xlu1 %1018 }
 0x3f2   : > { %v1040_v53 = vsel %vm622_vm1, %v708_v44, %v1019_v50 }
 0x407   : > { %v1021_v51 = vpop.permute.xlu0 %1020 }
 0x408   : > { %v1041_v60 = vsel %vm622_vm1, %v711_v45, %v1021_v51 }
 0x41e   : > { %v1027_v52 = vpop.permute.xlu1 %1026 }
 0x41f   : > { %v1042_v55 = vsel %vm660_vm2, %v1040_v53, %v1027_v52 }
 0x426   : > { %v1029_v56 = vpop.permute.xlu0 %1028  ;;  %v1035_v57 = vpop.permute.xlu1 %1034 }
 0x427   : > { %v1045_v58 = vsel %vm1044_vm5, %v1042_v55, %v1035_v57  ;;  %v1043_v61 = vsel %vm660_vm2, %v1041_v60, %v1029_v56 }
 0x428   : > { %v1047_v59 = vadd.f32 %v1045_v58, %v1955_v8 }
 0x42a   : > { %1049 = vst.msk [vmem:[%s483_s1] sm:$0xff] %vm498_vm0, %v1047_v59 }
 0x42e   : > { %v1037_v62 = vpop.permute.xlu0 %1036 }
 0x42f   : > { %v1046_v63 = vsel %vm1044_vm5, %v1043_v61, %v1037_v62 }
 0x430   : > { %v1048_v8 = vadd.f32 %v1046_v63, %v1961_v10 }
 0x432   : > { %1050 = vst.msk [vmem:[%s483_s1 + $0x8] sm:$0xff] %vm498_vm0, %v1048_v8 }
 0x433   : > { %1634 = shalt.err (!%p1631_p13)
}
 0x434   : > { %s1699_s18 = smov 128  }
 0x435   : > { %1298 = dma.vmem_to_hbm [thread:$0]  (%p1826_p7), %s1065_s15, 256, %s1067_s17, %s1052_s13, %s1699_s18, %s1699_s18, %s1696_s27  }
 0x436 PF: > { %s2166_s26 = sld [smem:[#allocation19_spill]] }
 0x437   : > { %s2168_s9 = sld [smem:[#allocation20_spill]] }
 0x43c   : > { %s1081_s16 = sand.u32 1, %s2166_s26  }
 0x43d   : > { %p2169_p0 = scmp.ge.s32.totalorder %s2168_s9, 2  ;;  %s1082_s1 = scalar_lea.sflag [#allocation4], %s1081_s16 }
 0x43f   : > { %p1321_p8 = pnand %p2169_p0, %p1785_p6 }
 0x441   : > { %p1322_p9 = pneg %p1321_p8 }
 0x443   : > { %1668 = dma.done.wait (%p1322_p9), %s1082_s1, 256  }
 0x444   : > { %1670 = vsyncadd (%p1322_p9), %s1082_s1, 4294967040  ;;  %s2170_s12 = sld [smem:[#allocation22_spill]]  ;;  %s2172_s30 = smov %s1677_s10 }
 0x445   : > { %s2171_s28 = sld [smem:[#allocation23_spill]]  ;;  %s2173_s10 = smov %s1681_s11 }
 0x44a   : > { %p27_p12 = scmp.ge.s32.totalorder %s2170_s12, 4  }
 0x44b   : > { %s2174_s11 = smov %s2171_s28 }
 0x44c   :  { %29 = sbr.rel (!%p27_p12) target bundleno = 13 (0xd), region = 137 }
 0x451   :  { %1088 = vsyncpa [#allocation3], 1 }
 0x452   :  { %1090 = vsyncpa [#allocation3 + $0x1], 1 }
 0x453   :  { %1091 = vsyncpa [#allocation6], 1 }
 0x454   :  { %1093 = vsyncpa [#allocation6 + $0x1], 1 }
 0x455   :  { %1094 = vsyncpa [#allocation9], 1 }
 0x456   :  { %1095 = vsyncpa [#allocation12], 1 }
 0x457   :  { %1096 = vsyncpa [#allocation4], 1 }
 0x458   :  { %1098 = vsyncpa [#allocation4 + $0x1], 1 }

</bundles_post_ra>
